<compile_context>
chip_gen: v7x
topology: tpu7x:2x2x1
jax: 0.10.0
libtpu: 0.0.40
codegen_flags: <defaults>
</compile_context>

<pallas_src>
import jax
import jax.numpy as jnp
from jax.experimental import pallas as pl
from jax.experimental.pallas import tpu as pltpu

IN_DIM = 10      # fc1 input  (num_digits)
HID_DIM = 100    # fc1 output
OUT_DIM = 4      # fc2 output
LANE = 128       # padded lane width

_VMEM = pltpu.MemorySpace.VMEM


def _round_up(n, m):
    return ((n + m - 1) // m) * m


def _mlp_kernel(x_ref, w1_ref, b1_ref, w2_ref, b2_ref, o_ref):
    # One fused step: both matmuls + ReLU on a (block_b, *) batch tile.
    x = x_ref[...]                                            # (Bb, 10)  f32
    h = jnp.dot(x, w1_ref[...], preferred_element_type=jnp.float32)
    h = jnp.maximum(h + b1_ref[...], 0.0)                     # (Bb, 128) padded lanes stay 0
    y = jnp.dot(h, w2_ref[...], preferred_element_type=jnp.float32)
    o_ref[...] = y + b2_ref[...]                              # (Bb, 128) lane-dense store


def pad_params(w1, b1, w2, b2):
    """Zero-pad lane dims to 128 once (padded lanes/rows contribute exactly 0)."""
    w1_p = jnp.zeros((IN_DIM, LANE), jnp.float32).at[:, :HID_DIM].set(w1)
    b1_p = jnp.zeros((1, LANE), jnp.float32).at[:, :HID_DIM].set(b1)
    w2_p = jnp.zeros((LANE, LANE), jnp.float32).at[:HID_DIM, :OUT_DIM].set(w2)
    b2_p = jnp.zeros((1, LANE), jnp.float32).at[:, :OUT_DIM].set(b2)
    return w1_p, b1_p, w2_p, b2_p


def neural_net_forward(x, w1_p, b1_p, w2_p, b2_p, *, block_b=512):
    """Pallas forward pass of NeuralNet on padded params. Returns (B, OUT_DIM)."""
    B = x.shape[0]
    # Batch tile: up to `block_b` rows per grid step (multiple of 8 sublanes).
    blk = min(block_b, _round_up(B, 8))
    blk = _round_up(blk, 8)
    B_pad = _round_up(B, blk)
    if B_pad != B:
        x = jnp.pad(x, ((0, B_pad - B), (0, 0)))

    out = pl.pallas_call(
        _mlp_kernel,
        out_shape=jax.ShapeDtypeStruct((B_pad, LANE), jnp.float32),
        grid=(B_pad // blk,),
        in_specs=[
            # batch tile marches with the grid
            pl.BlockSpec((blk, IN_DIM), lambda i: (i, 0), memory_space=_VMEM),
            # weights/biases: constant block index -> VMEM-resident across steps
            pl.BlockSpec((IN_DIM, LANE), lambda i: (0, 0), memory_space=_VMEM),
            pl.BlockSpec((1, LANE), lambda i: (0, 0), memory_space=_VMEM),
            pl.BlockSpec((LANE, LANE), lambda i: (0, 0), memory_space=_VMEM),
            pl.BlockSpec((1, LANE), lambda i: (0, 0), memory_space=_VMEM),
        ],
        out_specs=pl.BlockSpec((blk, LANE), lambda i: (i, 0), memory_space=_VMEM),
        compiler_params=pltpu.CompilerParams(
            dimension_semantics=("parallel",)),   # v7x: shard batch over 2 TCs
    )(x, w1_p, b1_p, w2_p, b2_p)

    return out[:B, :OUT_DIM]


def init_params(key):
    """Deterministic init mimicking nn.Linear's U(-1/sqrt(fan_in), 1/sqrt(fan_in))."""
    k1, k2, k3, k4 = jax.random.split(key, 4)
    lim1 = 1.0 / jnp.sqrt(jnp.float32(IN_DIM))
    lim2 = 1.0 / jnp.sqrt(jnp.float32(HID_DIM))
    w1 = jax.random.uniform(k1, (IN_DIM, HID_DIM), jnp.float32, -lim1, lim1)
    b1 = jax.random.uniform(k2, (HID_DIM,), jnp.float32, -lim1, lim1)
    w2 = jax.random.uniform(k3, (HID_DIM, OUT_DIM), jnp.float32, -lim2, lim2)
    b2 = jax.random.uniform(k4, (OUT_DIM,), jnp.float32, -lim2, lim2)
    return w1, b1, w2, b2


def _reference(x, w1, b1, w2, b2):
    return jnp.maximum(x @ w1 + b1, 0.0) @ w2 + b2


if __name__ == "__main__":
    # TODO(synk): input_binary() reads 'train_input.txt'; replaced with
    # in-script deterministic random 10-bit binary vectors.
    key = jax.random.PRNGKey(0)
    k_in, k_in2, k_p = jax.random.split(key, 3)

    w1, b1, w2, b2 = init_params(k_p)
    w1_p, b1_p, w2_p, b2_p = pad_params(w1, b1, w2, b2)

    # Small batch (single grid step).
    B = 8
    bits = jax.random.bernoulli(k_in, 0.5, (B, IN_DIM)).astype(jnp.float32)
    out = jax.block_until_ready(neural_net_forward(bits, w1_p, b1_p, w2_p, b2_p))
    ref = _reference(bits, w1, b1, w2, b2)
    assert out.shape == (B, OUT_DIM)
    assert jnp.allclose(out, ref, atol=1e-5, rtol=1e-5)

    # Larger, non-multiple batch exercising the multi-step grid + batch padding.
    B2 = 300
    bits2 = jax.random.bernoulli(k_in2, 0.5, (B2, IN_DIM)).astype(jnp.float32)
    out2 = jax.block_until_ready(
        neural_net_forward(bits2, w1_p, b1_p, w2_p, b2_p, block_b=128))
    ref2 = _reference(bits2, w1, b1, w2, b2)
    assert out2.shape == (B2, OUT_DIM)
    assert jnp.allclose(out2, ref2, atol=1e-5, rtol=1e-5)

    print("KERNEL_OK")
</pallas_src>

<mosaic_0001>
module attributes {stable_mosaic.version = 11 : i64} {
  func.func @_mlp_kernel(%arg0: i32, %arg1: memref<8x10xf32, #tpu.memory_space<vmem>>, %arg2: memref<10x128xf32, #tpu.memory_space<vmem>>, %arg3: memref<1x128xf32, #tpu.memory_space<vmem>>, %arg4: memref<128x128xf32, #tpu.memory_space<vmem>>, %arg5: memref<1x128xf32, #tpu.memory_space<vmem>>, %arg6: memref<8x128xf32, #tpu.memory_space<vmem>>) attributes {dimension_semantics = [#tpu.dimension_semantics<parallel>], iteration_bounds = array<i64: 1>, scalar_prefetch = 0 : i64, scratch_operands = 0 : i64, tpu.core_type = #tpu.core_type<tc>, window_params = [{transform_indices = @transform_0, window_bounds = array<i64: 8, 10>}, {pipeline_mode = #tpu.pipeline_mode<synchronous>, transform_indices = @transform_1, window_bounds = array<i64: 10, 128>}, {pipeline_mode = #tpu.pipeline_mode<synchronous>, transform_indices = @transform_2, window_bounds = array<i64: 1, 128>}, {pipeline_mode = #tpu.pipeline_mode<synchronous>, transform_indices = @transform_3, window_bounds = array<i64: 128, 128>}, {pipeline_mode = #tpu.pipeline_mode<synchronous>, transform_indices = @transform_4, window_bounds = array<i64: 1, 128>}, {transform_indices = @transform_5, window_bounds = array<i64: 8, 128>}]} {
    %c0 = arith.constant 0 : index
    %c0_0 = arith.constant 0 : index
    %0 = vector.load %arg1[%c0, %c0_0] : memref<8x10xf32, #tpu.memory_space<vmem>>, vector<8x10xf32>
    %c0_1 = arith.constant 0 : index
    %c0_2 = arith.constant 0 : index
    %1 = vector.load %arg2[%c0_1, %c0_2] : memref<10x128xf32, #tpu.memory_space<vmem>>, vector<10x128xf32>
    %cst = arith.constant dense<0.000000e+00> : vector<8x128xf32>
    %2 = tpu.matmul %0, %1, %cst {dimension_numbers = #tpu.dot_dimension_numbers<[1], [0], [0], [1], [0, 0, 1, 1], [], []>} : vector<8x10xf32>, vector<10x128xf32>, vector<8x128xf32> -> vector<8x128xf32>
    %c0_3 = arith.constant 0 : index
    %c0_4 = arith.constant 0 : index
    %3 = vector.load %arg3[%c0_3, %c0_4] : memref<1x128xf32, #tpu.memory_space<vmem>>, vector<1x128xf32>
    %4 = vector.broadcast %3 : vector<1x128xf32> to vector<8x128xf32>
    %5 = arith.addf %2, %4 : vector<8x128xf32>
    %cst_5 = arith.constant 0.000000e+00 : f32
    %6 = vector.broadcast %cst_5 : f32 to vector<8x128xf32>
    %7 = arith.maximumf %5, %6 : vector<8x128xf32>
    %c0_6 = arith.constant 0 : index
    %c0_7 = arith.constant 0 : index
    %8 = vector.load %arg4[%c0_6, %c0_7] : memref<128x128xf32, #tpu.memory_space<vmem>>, vector<128x128xf32>
    %cst_8 = arith.constant dense<0.000000e+00> : vector<8x128xf32>
    %9 = tpu.matmul %7, %8, %cst_8 {dimension_numbers = #tpu.dot_dimension_numbers<[1], [0], [0], [1], [0, 0, 1, 1], [], []>} : vector<8x128xf32>, vector<128x128xf32>, vector<8x128xf32> -> vector<8x128xf32>
    %c0_9 = arith.constant 0 : index
    %c0_10 = arith.constant 0 : index
    %10 = vector.load %arg5[%c0_9, %c0_10] : memref<1x128xf32, #tpu.memory_space<vmem>>, vector<1x128xf32>
    %11 = vector.broadcast %10 : vector<1x128xf32> to vector<8x128xf32>
    %12 = arith.addf %9, %11 : vector<8x128xf32>
    %c0_11 = arith.constant 0 : index
    %c0_12 = arith.constant 0 : index
    %13 = vector.load %arg6[%c0_11, %c0_12] : memref<8x128xf32, #tpu.memory_space<vmem>>, vector<8x128xf32>
    tpu.vector_store %arg6[%c0_11, %c0_12], %12 {strides = array<i32>} : memref<8x128xf32, #tpu.memory_space<vmem>>, vector<8x128xf32>,
    return
  }
  func.func @transform_0(%arg0: i32) -> (i32, i32) {
    %c0_i32 = arith.constant 0 : i32
    %c0_i32_0 = arith.constant 0 : i32
    return %arg0, %c0_i32 : i32, i32
  }
  func.func @transform_1(%arg0: i32) -> (i32, i32) {
    %c0_i32 = arith.constant 0 : i32
    %c0_i32_0 = arith.constant 0 : i32
    %c0_i32_1 = arith.constant 0 : i32
    return %c0_i32, %c0_i32_0 : i32, i32
  }
  func.func @transform_2(%arg0: i32) -> (i32, i32) {
    %c0_i32 = arith.constant 0 : i32
    %c0_i32_0 = arith.constant 0 : i32
    %c0_i32_1 = arith.constant 0 : i32
    return %c0_i32, %c0_i32_0 : i32, i32
  }
  func.func @transform_3(%arg0: i32) -> (i32, i32) {
    %c0_i32 = arith.constant 0 : i32
    %c0_i32_0 = arith.constant 0 : i32
    %c0_i32_1 = arith.constant 0 : i32
    return %c0_i32, %c0_i32_0 : i32, i32
  }
  func.func @transform_4(%arg0: i32) -> (i32, i32) {
    %c0_i32 = arith.constant 0 : i32
    %c0_i32_0 = arith.constant 0 : i32
    %c0_i32_1 = arith.constant 0 : i32
    return %c0_i32, %c0_i32_0 : i32, i32
  }
  func.func @transform_5(%arg0: i32) -> (i32, i32) {
    %c0_i32 = arith.constant 0 : i32
    %c0_i32_0 = arith.constant 0 : i32
    return %arg0, %c0_i32 : i32, i32
  }
}

</mosaic_0001>

<bundles_post_ra>
// kernel: tpu_custom_call.1
= control target key start
LH: loop header
LB: loop body
LE: loop exit
PB: predicated region body
PF: predicated region fallthrough
CT: control target
= control target key end

     0   :  { %10 = vsyncpa [#allocation3], 0  ;;  %s557_s0 = inlined_call_operand.hbm [shape: f32[8,10], index: 0, kind: input, shape index: {}]   ;;  %s558_s1 = inlined_call_operand.hbm [shape: f32[10,128], index: 1, kind: input, shape index: {}]   ;;  %s559_s2 = inlined_call_operand.vmem [shape: f32[1,128], index: 2, kind: input, shape index: {}]   ;;  %s560_s3 = inlined_call_operand.hbm [shape: f32[128,128], index: 3, kind: input, shape index: {}]   ;;  %s561_s4 = inlined_call_operand.vmem [shape: f32[1,128], index: 4, kind: input, shape index: {}]   ;;  %s562_s5 = inlined_call_operand.hbm [shape: f32[8,128], index: 5, kind: output, shape index: {}]  }
   0x1   :  { %11 = vsyncpa [#allocation6], 0 }
   0x2   :  { %12 = vsyncpa [#allocation4], 0  ;;  %s457_s18 = smov [#allocation5]   ;;  %s363_s22 = scalar_lea.hbm %s558_s1, 256 }
   0x3   :  { %s28_s19 = sshll.u32 %s457_s18, 4  ;;  %p364_p0 = scmp.ne.s32.totalorder %s558_s1, %s363_s22  ;;  %s29_s19 = int_to_ptr.vmem [resolvable:$true] %s28_s19 }
   0x4   :  { %p367_p1 = scmp.lt.u32.totalorder %s363_s22, %s558_s1 }
   0x6   :  { %p369_p2 = pnand %p367_p1, %p364_p0 }
   0x8   :  { %372 = shalt.err (!%p369_p2)
}
   0x9   :  { %s373_s27 = scalar_lea.vmem %s29_s19, 256  ;;  %p378_p4 = scmp.lt.s32.totalorder %s29_s19, %s29_s19 }
   0xa   :  { %p374_p3 = scmp.ne.s32.totalorder %s29_s19, %s373_s27  ;;  %p379_p5 = scmp.lt.s32.totalorder %s373_s27, %s373_s27 }
   0xc   :  { %p380_p6 = por %p379_p5, %p378_p4 }
   0xe   :  { %p381_p7 = pnand %p380_p6, %p374_p3 }
  0x10   :  { %384 = shalt.err (!%p381_p7)
}
  0x11   :  { %s458_s28 = smov 128   ;;  %s459_s29 = smov 8  }
  0x12   :  { %34 = dma.hbm_to_vmem [thread:$0]  %s558_s1, 256, %s29_s19, [#allocation6], %s458_s28, %s458_s28, %s459_s29  }
  0x13   :  { %s460_s7 = smov [#allocation2]   ;;  %s461_s9 = smov [#allocation7]  }
  0x14   :  { %s19_s8 = sshll.u32 %s460_s7, 4  ;;  %s42_s10 = sshll.u32 %s461_s9, 4  ;;  %s20_s8 = int_to_ptr.vmem [resolvable:$true] %s19_s8  ;;  %s43_s10 = int_to_ptr.vmem [resolvable:$true] %s42_s10 }
  0x15   :  { %s385_s13 = scalar_lea.hbm %s557_s0, 128 }
  0x16   :  { %p386_p8 = scmp.ne.s32.totalorder %s557_s0, %s385_s13  ;;  %p389_p9 = scmp.lt.u32.totalorder %s385_s13, %s557_s0 }
  0x18   :  { %p391_p10 = pnand %p389_p9, %p386_p8 }
  0x1a   :  { %394 = shalt.err (!%p391_p10)
}
  0x1b   :  { %s395_s1 = scalar_lea.vmem %s20_s8, 128  ;;  %p400_p12 = scmp.lt.s32.totalorder %s20_s8, %s20_s8 }
  0x1c   :  { %p396_p11 = scmp.ne.s32.totalorder %s20_s8, %s395_s1  ;;  %p401_p13 = scmp.lt.s32.totalorder %s395_s1, %s395_s1 }
  0x1e   :  { %p402_p0 = por %p401_p13, %p400_p12 }
  0x20   :  { %p403_p1 = pnand %p402_p0, %p396_p11 }
  0x22   :  { %406 = shalt.err (!%p403_p1)
}
  0x23   :  { %22 = dma.hbm_to_vmem [thread:$0]  %s557_s0, 128, %s20_s8, [#allocation3]  }
  0x24   :  { %s407_s22 = scalar_lea.hbm %s560_s3, 2048 }
  0x25   :  { %p408_p2 = scmp.ne.s32.totalorder %s560_s3, %s407_s22  ;;  %p411_p3 = scmp.lt.u32.totalorder %s407_s22, %s560_s3 }
  0x27   :  { %p413_p4 = pnand %p411_p3, %p408_p2 }
  0x29   :  { %416 = shalt.err (!%p413_p4)
}
  0x2a   :  { %s417_s27 = scalar_lea.vmem %s43_s10, 2048  ;;  %p422_p6 = scmp.lt.s32.totalorder %s43_s10, %s43_s10 }
  0x2b   :  { %p418_p5 = scmp.ne.s32.totalorder %s43_s10, %s417_s27  ;;  %p423_p7 = scmp.lt.s32.totalorder %s417_s27, %s417_s27 }
  0x2d   :  { %p424_p8 = por %p423_p7, %p422_p6 }
  0x2f   :  { %p425_p9 = pnand %p424_p8, %p418_p5 }
  0x31   :  { %428 = shalt.err (!%p425_p9)
}
  0x32   :  { %48 = dma.hbm_to_vmem [thread:$0]  %s560_s3, 2048, %s43_s10, [#allocation6], %s458_s28, %s458_s28, %s459_s29  }
  0x33   :  { %451 = dma.done.wait [#allocation3], 128  }
  0x34   :  { %452 = vsyncadd [#allocation3], 4294967168 }
  0x35   :  { %453 = dma.done.wait [#allocation6], 2304  }
  0x36   :  { %454 = vsyncadd [#allocation6], 4294964992  ;;  %v462_v0 = vmov 0.0|0.0   ;;  %vm463_vm0 = vmmov 0   ;;  %v464_v1 = vmov 0.0   ;;  %vm74_vm1 = vcmask 1041408  }
  0x37   :  { %325 = vmatprep.subr.bf16.mxu0 %v462_v0  ;;  %329 = vmatprep.subr.bf16.mxu1 %v462_v0  ;;  %v61_v2 = vld [vmem:[#allocation5] sm:$0xff]  ;;  %v62_v3 = vld [vmem:[#allocation5 + $0x8] sm:$0x3]  ;;  %vm465_vm2 = vmmov 1   ;;  %v149_v5 = vld [vmem:[#allocation7] sm:$0xff]  ;;  %vm70_vm4 = vcmask 80896  }
  0x38   :  { %287 = vmatprep.mubr.msk.f32.mxu0 %vm463_vm0, %v464_v1  ;;  %322 = vmatprep.mubr.msk.f32.mxu1 %vm463_vm0, %v464_v1  ;;  %vm327_vm3 = vmpackc.low %vm74_vm1, %vm465_vm2  ;;  %v326_v4 = vpack.c.bf16 %v62_v3, %v61_v2  ;;  %v150_v6 = vld [vmem:[#allocation7 + $0x8] sm:$0xff]  ;;  %v151_v7 = vld [vmem:[#allocation7 + $0x10] sm:$0xff]  ;;  %s466_s7 = smov [#allocation8]  }
  0x39   :  { %v330_v8 = vpack.c.bf16 %v150_v6, %v149_v5  ;;  %v152_v9 = vld [vmem:[#allocation7 + $0x18] sm:$0xff]  ;;  %v60_v10 = vld [vmem:[#allocation2] sm:$0xff]  ;;  %v153_v12 = vld [vmem:[#allocation7 + $0x20] sm:$0xff]  ;;  %s249_s8 = sshll.u32 %s466_s7, 4  ;;  %s250_s8 = int_to_ptr.vmem [resolvable:$true] %s249_s8 }
  0x3a   :  { %328 = vmatpush3.bf16.msk.msra.mxu0 %vm327_vm3, %v326_v4  ;;  %v333_v11 = vpack.c.bf16 %v152_v9, %v151_v7  ;;  %v154_v13 = vld [vmem:[#allocation7 + $0x28] sm:$0xff]  ;;  %v155_v15 = vld [vmem:[#allocation7 + $0x30] sm:$0xff]  ;;  %v156_v16 = vld [vmem:[#allocation7 + $0x38] sm:$0xff]  ;;  %s429_s9 = scalar_lea.vmem %s250_s8, 128  ;;  %p434_p11 = scmp.lt.s32.totalorder %s250_s8, %s250_s8 }
  0x3b   :  { %331 = vmatpush3.bf16.msra.mxu1 %v330_v8  ;;  %v336_v14 = vpack.c.bf16 %v154_v13, %v153_v12  ;;  %v339_v17 = vpack.c.bf16 %v156_v16, %v155_v15  ;;  %v157_v18 = vld [vmem:[#allocation7 + $0x40] sm:$0xff]  ;;  %v158_v19 = vld [vmem:[#allocation7 + $0x48] sm:$0xff]  ;;  %v159_v21 = vld [vmem:[#allocation7 + $0x50] sm:$0xff]  ;;  %p430_p10 = scmp.ne.s32.totalorder %s250_s8, %s429_s9  ;;  %p435_p12 = scmp.lt.s32.totalorder %s429_s9, %s429_s9 }
  0x3c   :  { %332 = vmatprep.subr.bf16.mxu1 %v462_v0  ;;  %v342_v20 = vpack.c.bf16 %v158_v19, %v157_v18  ;;  %v160_v22 = vld [vmem:[#allocation7 + $0x58] sm:$0xff]  ;;  %v161_v24 = vld [vmem:[#allocation7 + $0x60] sm:$0xff]  ;;  %v162_v25 = vld [vmem:[#allocation7 + $0x68] sm:$0xff] }
  0x3d   :  { %288 = vmatmul.mubr.msk.f32.vlgmr.msra.gmra.mrb[0].mxu0 %vm70_vm4, %v60_v10  ;;  %v345_v23 = vpack.c.bf16 %v160_v22, %v159_v21  ;;  %v348_v26 = vpack.c.bf16 %v162_v25, %v161_v24  ;;  %v163_v27 = vld [vmem:[#allocation7 + $0x70] sm:$0xff]  ;;  %v164_v28 = vld [vmem:[#allocation7 + $0x78] sm:$0xff]  ;;  %v259_v30 = vld [vmem:[%s559_s2] ss:$0 sm:$0xff]  ;;  %p436_p13 = por %p435_p12, %p434_p11 }
  0x3e   :  { %v351_v29 = vpack.c.bf16 %v164_v28, %v163_v27  ;;  %v262_v35 = vld [vmem:[%s561_s4] ss:$0 sm:$0xff] }
  0x3f   :  { %334 = vmatpush3.bf16.msra.mxu1 %v333_v11  ;;  %p437_p0 = pnand %p436_p13, %p430_p10 }
  0x40   :  { %335 = vmatprep.subr.bf16.mxu1 %v462_v0 }
  0x43   :  { %337 = vmatpush3.bf16.msra.mxu1 %v336_v14 }
  0x44   :  { %338 = vmatprep.subr.bf16.mxu1 %v462_v0 }
  0x47   :  { %340 = vmatpush3.bf16.msra.mxu1 %v339_v17 }
  0x48   :  { %341 = vmatprep.subr.bf16.mxu1 %v462_v0 }
  0x4b   :  { %343 = vmatpush3.bf16.msra.mxu1 %v342_v20 }
  0x4c   :  { %344 = vmatprep.subr.bf16.mxu1 %v462_v0 }
  0x4f   :  { %346 = vmatpush3.bf16.msra.mxu1 %v345_v23 }
  0x50   :  { %347 = vmatprep.subr.bf16.mxu1 %v462_v0 }
  0x53   :  { %349 = vmatpush3.bf16.msra.mxu1 %v348_v26 }
  0x54   :  { %350 = vmatprep.subr.bf16.mxu1 %v462_v0 }
  0x57   :  { %352 = vmatpush3.bf16.msra.mxu1 %v351_v29 }
 0x110   :  { %v144_v31 = vpop.f32.mrb[0].mxu0 }
 0x111   :  { %v145_v32 = vadd.f32 %v259_v30, %v144_v31  ;;  %v289_v33 = vpop.f32.mrb[1].mxu0 }
 0x113   :  { %v148_v34 = vmax.f32 %v145_v32, 0.0 }
 0x115   :  { %323 = vmatmul.mubr.f32.vlgmr.msra.gmra.mrb[0].mxu1 %v148_v34 }
 0x1e8   :  { %v238_v36 = vpop.f32.mrb[0].mxu1 }
 0x1e9   :  { %v239_v37 = vadd.f32 %v262_v35, %v238_v36  ;;  %v324_v38 = vpop.f32.mrb[1].mxu1 }
 0x1eb   :  { %242 = vst [vmem:[#allocation8] sm:$0xff] %v239_v37 }
 0x1ec   :  { %440 = shalt.err (!%p437_p0)
}
 0x1ed   :  { %s441_s11 = scalar_lea.hbm %s562_s5, 128 }
 0x1ee   :  { %p442_p1 = scmp.ne.s32.totalorder %s562_s5, %s441_s11  ;;  %p445_p2 = scmp.lt.u32.totalorder %s441_s11, %s562_s5 }
 0x1f0   :  { %p447_p3 = pnand %p445_p2, %p442_p1 }
 0x1f2   :  { %450 = shalt.err (!%p447_p3)
}
 0x1f3   :  { %252 = dma.vmem_to_hbm [thread:$0]  %s250_s8, 128, %s562_s5, [#allocation4]  }
 0x1f4   :  { %455 = dma.done.wait [#allocation4], 128  }
 0x1f5   :  { %456 = vsyncadd [#allocation4], 4294967168 }
 0x1f6   :  { %256 = vsyncpa [#allocation3], 1 }
 0x1f7   :  { %257 = vsyncpa [#allocation6], 1 }
 0x1f8   :  { %258 = vsyncpa [#allocation4], 1 }

</bundles_post_ra>
